<compile_context>
chip_gen: v7x
topology: tpu7x:2x2x1
jax: 0.10.0
libtpu: 0.0.40
codegen_flags: <defaults>
</compile_context>

<pallas_src>
import functools

import jax
import jax.numpy as jnp
import numpy as np
from jax.experimental import pallas as pl
from jax.experimental.pallas import tpu as pltpu


def _round_up(x, m):
    return ((x + m - 1) // m) * m


def _pick_vmem_limit():
    """Per-generation VMEM limit: ~3/4 of physical, capped at 100 MiB."""
    phys = 128 * 1024 * 1024
    try:
        info = pltpu.get_tpu_info()
        phys = int(getattr(info, "vmem_capacity_bytes", phys))
    except Exception:
        pass
    return int(min(phys * 3 // 4, 100 * 1024 * 1024))


def _conv_band(w_oihw, W, dtype):
    """Fold a KHxKW conv's KH+KW taps + channels into one deep-K banded matrix.

    Returns B with shape (KH*W*Cin, W*Cout) such that
        B[kh*W*Cin + (j+dj)*Cin + ci, j*Cout + co] = w[co, ci, kh, dj + (KW-1)//2]
    for 0 <= j+dj < W.  Zero padding along W is absorbed by simply dropping
    out-of-range rows of the band; the KH axis is handled by the kernel
    concatenating KH row-shifted input windows along K.
    """
    Co, Ci, KH, KW = w_oihw.shape
    pad = (KW - 1) // 2
    wt = jnp.transpose(w_oihw, (2, 3, 1, 0)).astype(jnp.float32)  # (KH, KW, Ci, Co)
    bands = []
    for kh in range(KH):
        B = jnp.zeros((W * Ci, W * Co), jnp.float32)
        for kw in range(KW):
            dj = kw - pad
            E = jnp.eye(W, k=-dj, dtype=jnp.float32)  # E[j+dj, j] = 1
            B = B + jnp.kron(E, wt[kh, kw])
        bands.append(B)
    return jnp.concatenate(bands, axis=0).astype(dtype)  # (KH*W*Ci, W*Co)


def _fused_kernel(H, T, x_ref, w1b_ref, b1_ref, a1_ref, w2b_ref, b2_ref, o_ref):
    """Fused conv5x5 -> PReLU -> conv3x3 for one (batch, row-tile) grid cell.

    x_ref  : (1, Hp+8, W*Cin)  full padded per-batch input (VMEM resident,
                               DMA'd once per batch since its block index is
                               constant along the row-tile axis)
    w1b_ref: (5*W*Cin,  W*Cout)  deep-K banded conv1 weights
    w2b_ref: (3*W*Cout, W*Cout)  deep-K banded conv2 weights
    b1/a1/b2: (1, W*Cout)        bias / PReLU alpha tiled along lanes
    o_ref  : (1, T, W*Cout)      lane-dense final output tile
    """
    R = T + 2                                   # conv1 rows needed (tile + conv2 halo)
    base = pl.multiple_of(pl.program_id(1) * T, 8)   # first padded input row of window

    # Haloed (T+8)-row input window for this tile (sublane-aligned slice).
    win = x_ref[0, pl.ds(base, T + 8), :]       # (T+8, W*Cin)

    # ---- conv1 (5x5, pad 2): ONE deep-K matmul, K = 5*W*Cin. ----
    lhs1 = jnp.concatenate([win[kh:kh + R, :] for kh in range(5)], axis=-1)
    acc1 = jnp.dot(lhs1.astype(w1b_ref.dtype), w1b_ref[...],
                   preferred_element_type=jnp.float32)
    acc1 = acc1 + b1_ref[...]
    # PReLU with per-channel alpha (tiled along the flattened W*Cout lane axis).
    acc1 = jnp.where(acc1 >= 0.0, acc1, acc1 * a1_ref[...])
    # Rows outside the valid image act as conv2's zero padding in H.
    row = jax.lax.broadcasted_iota(jnp.int32, (R, 1), 0) + (base - 1)
    acc1 = jnp.where((row >= 0) & (row < H), acc1, 0.0)

    # ---- conv2 (3x3, pad 1): ONE deep-K matmul, K = 3*W*Cout. ----
    lhs2 = jnp.concatenate([acc1[kh:kh + T, :] for kh in range(3)], axis=-1)
    acc2 = jnp.dot(lhs2.astype(w2b_ref.dtype), w2b_ref[...],
                   preferred_element_type=jnp.float32)
    acc2 = acc2 + b2_ref[...]

    o_ref[0] = acc2.astype(o_ref.dtype)


def raise_channel_forward(x_nchw, params, *, max_tile_h=128, band_dtype=jnp.float32):
    """Pallas forward pass. Input/output are NCHW to match PyTorch semantics.

    band_dtype=jnp.bfloat16 doubles MXU throughput on v6e/v7x and halves the
    resident band VMEM (f32 accumulation kept), at the cost of ~1e-3-level
    numeric drift; default stays f32.
    """
    N, Cin, H, W = x_nchw.shape
    w1, b1, w2, b2, alpha = (params["w1"], params["b1"], params["w2"],
                             params["b2"], params["alpha"])
    Cout = w1.shape[0]
    assert w1.shape == (Cout, Cin, 5, 5) and w2.shape == (Cout, Cout, 3, 3)

    # Row tile: collapse the row-tile axis whenever the (padded) image fits the
    # cap, so small shapes run with grid == (N, 1).
    Hp8 = _round_up(H, 8)
    T = min(_round_up(max_tile_h, 8), Hp8)
    Hp = _round_up(H, T)
    num_t = Hp // T

    # NCHW -> NHWC (f32); pad H by 3 on top (5x5 halo of 2 + 3x3 halo of 1) and
    # enough at the bottom so every tile's (T+8)-row window is in bounds; then
    # flatten (W, Cin) onto the lane axis.
    x = jnp.transpose(x_nchw, (0, 2, 3, 1)).astype(jnp.float32)
    x = jnp.pad(x, ((0, 0), (3, Hp - H + 5), (0, 0), (0, 0)))
    x_flat = x.reshape(N, Hp + 8, W * Cin)

    # Deep-K banded (im2col-free) weights + lane-tiled bias / PReLU alpha.
    w1b = _conv_band(w1, W, band_dtype)                       # (5*W*Cin,  W*Cout)
    w2b = _conv_band(w2, W, band_dtype)                       # (3*W*Cout, W*Cout)
    b1f = jnp.tile(b1.astype(jnp.float32), W).reshape(1, W * Cout)
    a1f = jnp.tile(alpha.astype(jnp.float32), W).reshape(1, W * Cout)
    b2f = jnp.tile(b2.astype(jnp.float32), W).reshape(1, W * Cout)

    vmem = pl.BlockSpec(memory_space=pltpu.MemorySpace.VMEM)
    out_flat = pl.pallas_call(
        functools.partial(_fused_kernel, H, T),
        out_shape=jax.ShapeDtypeStruct((N, Hp, W * Cout), jnp.float32),
        grid=(N, num_t),
        in_specs=[
            # Whole padded per-batch image; block index constant along t so it
            # is DMA'd once per batch and revisited across row tiles.
            pl.BlockSpec((1, Hp + 8, W * Cin), lambda n, t: (n, 0, 0)),
            vmem,   # w1 bands (5*W*Cin,  W*Cout) -- resident in VMEM
            vmem,   # b1       (1, W*Cout)
            vmem,   # alpha    (1, W*Cout)
            vmem,   # w2 bands (3*W*Cout, W*Cout)
            vmem,   # b2       (1, W*Cout)
        ],
        out_specs=pl.BlockSpec((1, T, W * Cout), lambda n, t: (n, t, 0)),
        compiler_params=pltpu.CompilerParams(
            dimension_semantics=("parallel", "parallel"),
            vmem_limit_bytes=_pick_vmem_limit(),
        ),
    )(x_flat, w1b, b1f, a1f, w2b, b2f)

    out = out_flat.reshape(N, Hp, W, Cout)[:, :H]
    return jnp.transpose(out, (0, 3, 1, 2)).astype(x_nchw.dtype)   # NHWC -> NCHW


def init_params(key, in_channel, target_channel):
    k1, k2, k3, k4 = jax.random.split(key, 4)
    fan1 = in_channel * 5 * 5
    fan2 = target_channel * 3 * 3
    w1 = jax.random.normal(k1, (target_channel, in_channel, 5, 5), jnp.float32) / np.sqrt(fan1)
    b1 = jax.random.normal(k2, (target_channel,), jnp.float32) * 0.01
    w2 = jax.random.normal(k3, (target_channel, target_channel, 3, 3), jnp.float32) / np.sqrt(fan2)
    b2 = jax.random.normal(k4, (target_channel,), jnp.float32) * 0.01
    alpha = jnp.full((target_channel,), 0.01, jnp.float32)  # PReLU init=0.01
    return {"w1": w1, "b1": b1, "w2": w2, "b2": b2, "alpha": alpha}


def _reference_forward(x_nchw, params):
    """Plain-JAX reference (lax.conv, HIGHEST precision) for a sanity check."""
    x = jnp.transpose(x_nchw, (0, 2, 3, 1))
    dn = ("NHWC", "HWIO", "NHWC")

    def conv(x, w_oihw, b, pad):
        w = jnp.transpose(w_oihw, (2, 3, 1, 0))
        y = jax.lax.conv_general_dilated(
            x, w, (1, 1), [(pad, pad), (pad, pad)], dimension_numbers=dn,
            precision=jax.lax.Precision.HIGHEST,
        )
        return y + b[None, None, None, :]

    y = conv(x, params["w1"], params["b1"], 2)
    a = params["alpha"][None, None, None, :]
    y = jnp.where(y >= 0, y, y * a)
    y = conv(y, params["w2"], params["b2"], 1)
    return jnp.transpose(y, (0, 3, 1, 2))


if __name__ == "__main__":
    N, Cin, Cout, H, W = 2, 4, 8, 16, 16
    key = jax.random.PRNGKey(0)
    kx, kp = jax.random.split(key)
    x = jax.random.normal(kx, (N, Cin, H, W), jnp.float32)
    params = init_params(kp, Cin, Cout)

    # Row-tile axis collapses (T = 16) -> grid is (N, 1); batch axis parallel.
    out = raise_channel_forward(x, params)
    out = jax.block_until_ready(out)
    assert out.shape == (N, Cout, H, W), out.shape

    ref = jax.block_until_ready(_reference_forward(x, params))
    np.testing.assert_allclose(np.asarray(out), np.asarray(ref), atol=1e-3, rtol=1e-3)

    print("KERNEL_OK")
</pallas_src>

<mosaic_0001>
module attributes {stable_mosaic.version = 11 : i64} {
  func.func @_fused_kernel(%arg0: i32, %arg1: i32, %arg2: memref<1x24x64xf32, #tpu.memory_space<vmem>>, %arg3: memref<320x128xf32, #tpu.memory_space<vmem>>, %arg4: memref<1x128xf32, #tpu.memory_space<vmem>>, %arg5: memref<1x128xf32, #tpu.memory_space<vmem>>, %arg6: memref<384x128xf32, #tpu.memory_space<vmem>>, %arg7: memref<1x128xf32, #tpu.memory_space<vmem>>, %arg8: memref<1x16x128xf32, #tpu.memory_space<vmem>>) attributes {dimension_semantics = [#tpu.dimension_semantics<parallel>, #tpu.dimension_semantics<parallel>], iteration_bounds = array<i64: 2, 1>, scalar_prefetch = 0 : i64, scratch_operands = 0 : i64, tpu.core_type = #tpu.core_type<tc>, window_params = [{transform_indices = @transform_0, window_bounds = array<i64: 1, 24, 64>}, {pipeline_mode = #tpu.pipeline_mode<synchronous>, transform_indices = @transform_1, window_bounds = array<i64: 320, 128>}, {pipeline_mode = #tpu.pipeline_mode<synchronous>, transform_indices = @transform_2, window_bounds = array<i64: 1, 128>}, {pipeline_mode = #tpu.pipeline_mode<synchronous>, transform_indices = @transform_3, window_bounds = array<i64: 1, 128>}, {pipeline_mode = #tpu.pipeline_mode<synchronous>, transform_indices = @transform_4, window_bounds = array<i64: 384, 128>}, {pipeline_mode = #tpu.pipeline_mode<synchronous>, transform_indices = @transform_5, window_bounds = array<i64: 1, 128>}, {transform_indices = @transform_6, window_bounds = array<i64: 1, 16, 128>}]} {
    %c16_i32 = arith.constant 16 : i32
    %0 = arith.muli %arg1, %c16_i32 : i32
    %1 = tpu.assume_multiple %0, 8 : i32
    %c0 = arith.constant 0 : index
    %2 = arith.index_cast %1 : i32 to index
    %c0_0 = arith.constant 0 : index
    %3 = vector.load %arg2[%c0, %2, %c0_0] : memref<1x24x64xf32, #tpu.memory_space<vmem>>, vector<1x24x64xf32>
    %4 = vector.shape_cast %3 : vector<1x24x64xf32> to vector<24x64xf32>
    %5 = vector.extract_strided_slice %4 {offsets = [0, 0], sizes = [18, 64], strides = [1, 1]} : vector<24x64xf32> to vector<18x64xf32>
    %6 = vector.extract_strided_slice %4 {offsets = [1, 0], sizes = [18, 64], strides = [1, 1]} : vector<24x64xf32> to vector<18x64xf32>
    %7 = vector.extract_strided_slice %4 {offsets = [2, 0], sizes = [18, 64], strides = [1, 1]} : vector<24x64xf32> to vector<18x64xf32>
    %8 = vector.extract_strided_slice %4 {offsets = [3, 0], sizes = [18, 64], strides = [1, 1]} : vector<24x64xf32> to vector<18x64xf32>
    %9 = vector.extract_strided_slice %4 {offsets = [4, 0], sizes = [18, 64], strides = [1, 1]} : vector<24x64xf32> to vector<18x64xf32>
    %10 = tpu.concatenate %5, %6, %7, %8, %9 in 1 : vector<18x64xf32>, vector<18x64xf32>, vector<18x64xf32>, vector<18x64xf32>, vector<18x64xf32> -> vector<18x320xf32>
    %c0_1 = arith.constant 0 : index
    %c0_2 = arith.constant 0 : index
    %11 = vector.load %arg3[%c0_1, %c0_2] : memref<320x128xf32, #tpu.memory_space<vmem>>, vector<320x128xf32>
    %cst = arith.constant dense<0.000000e+00> : vector<18x128xf32>
    %12 = tpu.matmul %10, %11, %cst {dimension_numbers = #tpu.dot_dimension_numbers<[1], [0], [0], [1], [0, 0, 1, 1], [], []>} : vector<18x320xf32>, vector<320x128xf32>, vector<18x128xf32> -> vector<18x128xf32>
    %c0_3 = arith.constant 0 : index
    %c0_4 = arith.constant 0 : index
    %13 = vector.load %arg4[%c0_3, %c0_4] : memref<1x128xf32, #tpu.memory_space<vmem>>, vector<1x128xf32>
    %14 = vector.broadcast %13 : vector<1x128xf32> to vector<18x128xf32>
    %15 = arith.addf %12, %14 : vector<18x128xf32>
    %cst_5 = arith.constant 0.000000e+00 : f32
    %16 = vector.broadcast %cst_5 : f32 to vector<18x128xf32>
    %17 = arith.cmpf oge, %15, %16 : vector<18x128xf32>
    %c0_6 = arith.constant 0 : index
    %c0_7 = arith.constant 0 : index
    %18 = vector.load %arg5[%c0_6, %c0_7] : memref<1x128xf32, #tpu.memory_space<vmem>>, vector<1x128xf32>
    %19 = vector.broadcast %18 : vector<1x128xf32> to vector<18x128xf32>
    %20 = arith.mulf %15, %19 : vector<18x128xf32>
    %21 = arith.select %17, %15, %20 : vector<18x128xi1>, vector<18x128xf32>
    %22 = tpu.iota {dimensions = array<i32: 0>} : vector<18x1xi32>
    %c1_i32 = arith.constant 1 : i32
    %23 = arith.subi %1, %c1_i32 : i32
    %24 = vector.broadcast %23 : i32 to vector<18x1xi32>
    %25 = arith.addi %22, %24 : vector<18x1xi32>
    %c0_i32 = arith.constant 0 : i32
    %26 = vector.broadcast %c0_i32 : i32 to vector<18x1xi32>
    %27 = arith.cmpi sge, %25, %26 : vector<18x1xi32>
    %c16_i32_8 = arith.constant 16 : i32
    %28 = vector.broadcast %c16_i32_8 : i32 to vector<18x1xi32>
    %29 = arith.cmpi slt, %25, %28 : vector<18x1xi32>
    %30 = arith.andi %27, %29 : vector<18x1xi1>
    %cst_9 = arith.constant 0.000000e+00 : f32
    %31 = vector.shape_cast %30 : vector<18x1xi1> to vector<18x1xi1>
    %32 = vector.broadcast %31 : vector<18x1xi1> to vector<18x128xi1>
    %33 = vector.broadcast %cst_9 : f32 to vector<18x128xf32>
    %34 = arith.select %32, %21, %33 : vector<18x128xi1>, vector<18x128xf32>
    %35 = vector.extract_strided_slice %34 {offsets = [0, 0], sizes = [16, 128], strides = [1, 1]} : vector<18x128xf32> to vector<16x128xf32>
    %36 = vector.extract_strided_slice %34 {offsets = [1, 0], sizes = [16, 128], strides = [1, 1]} : vector<18x128xf32> to vector<16x128xf32>
    %37 = vector.extract_strided_slice %34 {offsets = [2, 0], sizes = [16, 128], strides = [1, 1]} : vector<18x128xf32> to vector<16x128xf32>
    %38 = tpu.concatenate %35, %36, %37 in 1 : vector<16x128xf32>, vector<16x128xf32>, vector<16x128xf32> -> vector<16x384xf32>
    %c0_10 = arith.constant 0 : index
    %c0_11 = arith.constant 0 : index
    %39 = vector.load %arg6[%c0_10, %c0_11] : memref<384x128xf32, #tpu.memory_space<vmem>>, vector<384x128xf32>
    %cst_12 = arith.constant dense<0.000000e+00> : vector<16x128xf32>
    %40 = tpu.matmul %38, %39, %cst_12 {dimension_numbers = #tpu.dot_dimension_numbers<[1], [0], [0], [1], [0, 0, 1, 1], [], []>} : vector<16x384xf32>, vector<384x128xf32>, vector<16x128xf32> -> vector<16x128xf32>
    %c0_13 = arith.constant 0 : index
    %c0_14 = arith.constant 0 : index
    %41 = vector.load %arg7[%c0_13, %c0_14] : memref<1x128xf32, #tpu.memory_space<vmem>>, vector<1x128xf32>
    %42 = vector.broadcast %41 : vector<1x128xf32> to vector<16x128xf32>
    %43 = arith.addf %40, %42 : vector<16x128xf32>
    %c0_15 = arith.constant 0 : index
    %c0_16 = arith.constant 0 : index
    %c0_17 = arith.constant 0 : index
    %44 = vector.load %arg8[%c0_15, %c0_16, %c0_17] : memref<1x16x128xf32, #tpu.memory_space<vmem>>, vector<1x16x128xf32>
    %45 = vector.shape_cast %44 : vector<1x16x128xf32> to vector<16x128xf32>
    %46 = vector.shape_cast %43 : vector<16x128xf32> to vector<1x16x128xf32>
    tpu.vector_store %arg8[%c0_15, %c0_16, %c0_17], %46 {strides = array<i32>} : memref<1x16x128xf32, #tpu.memory_space<vmem>>, vector<1x16x128xf32>,
    return
  }
  func.func @transform_0(%arg0: i32, %arg1: i32) -> (i32, i32, i32) {
    %c0_i32 = arith.constant 0 : i32
    %c0_i32_0 = arith.constant 0 : i32
    %c0_i32_1 = arith.constant 0 : i32
    return %arg0, %c0_i32, %c0_i32_0 : i32, i32, i32
  }
  func.func @transform_1(%arg0: i32, %arg1: i32) -> (i32, i32) {
    %c0_i32 = arith.constant 0 : i32
    %c0_i32_0 = arith.constant 0 : i32
    %c0_i32_1 = arith.constant 0 : i32
    return %c0_i32, %c0_i32_0 : i32, i32
  }
  func.func @transform_2(%arg0: i32, %arg1: i32) -> (i32, i32) {
    %c0_i32 = arith.constant 0 : i32
    %c0_i32_0 = arith.constant 0 : i32
    %c0_i32_1 = arith.constant 0 : i32
    return %c0_i32, %c0_i32_0 : i32, i32
  }
  func.func @transform_3(%arg0: i32, %arg1: i32) -> (i32, i32) {
    %c0_i32 = arith.constant 0 : i32
    %c0_i32_0 = arith.constant 0 : i32
    %c0_i32_1 = arith.constant 0 : i32
    return %c0_i32, %c0_i32_0 : i32, i32
  }
  func.func @transform_4(%arg0: i32, %arg1: i32) -> (i32, i32) {
    %c0_i32 = arith.constant 0 : i32
    %c0_i32_0 = arith.constant 0 : i32
    %c0_i32_1 = arith.constant 0 : i32
    return %c0_i32, %c0_i32_0 : i32, i32
  }
  func.func @transform_5(%arg0: i32, %arg1: i32) -> (i32, i32) {
    %c0_i32 = arith.constant 0 : i32
    %c0_i32_0 = arith.constant 0 : i32
    %c0_i32_1 = arith.constant 0 : i32
    return %c0_i32, %c0_i32_0 : i32, i32
  }
  func.func @transform_6(%arg0: i32, %arg1: i32) -> (i32, i32, i32) {
    %c0_i32 = arith.constant 0 : i32
    %c0_i32_0 = arith.constant 0 : i32
    return %arg0, %arg1, %c0_i32 : i32, i32, i32
  }
}

</mosaic_0001>

<bundles_post_ra>
// kernel: tpu_custom_call.1
= control target key start
LH: loop header
LB: loop body
LE: loop exit
PB: predicated region body
PF: predicated region fallthrough
CT: control target
= control target key end

     0   :  { %s2190_s0 = inlined_call_operand.hbm [shape: f32[2,24,64], index: 0, kind: input, shape index: {}]   ;;  %s2191_s1 = inlined_call_operand.hbm [shape: f32[320,128], index: 1, kind: input, shape index: {}]   ;;  %s2192_s2 = inlined_call_operand.hbm [shape: f32[1,128], index: 2, kind: input, shape index: {}]   ;;  %s2193_s3 = inlined_call_operand.hbm [shape: f32[1,128], index: 3, kind: input, shape index: {}]   ;;  %s2194_s4 = inlined_call_operand.hbm [shape: f32[384,128], index: 4, kind: input, shape index: {}]   ;;  %s2195_s5 = inlined_call_operand.hbm [shape: f32[1,128], index: 5, kind: input, shape index: {}]   ;;  %s2196_s6 = inlined_call_operand.hbm [shape: f32[2,16,128], index: 6, kind: output, shape index: {}]  }
   0x1   :  { %2205 = sst [smem:[#allocation19_spill]] %s2191_s1 }
   0x2   :  { %2206 = sst [smem:[#allocation20_spill]] %s2192_s2 }
   0x3   :  { %2207 = sst [smem:[#allocation21_spill]] %s2193_s3 }
   0x4   :  { %11 = vsyncpa [#allocation3], 0 }
   0x5   :  { %13 = vsyncpa [#allocation3 + $0x1], 0 }
   0x6   :  { %14 = vsyncpa [#allocation6], 0 }
   0x7   :  { %15 = vsyncpa [#allocation9], 0 }
   0x8   :  { %16 = vsyncpa [#allocation12], 0 }
   0x9   :  { %17 = vsyncpa [#allocation4], 0 }
   0xa   :  { %19 = vsyncpa [#allocation4 + $0x1], 0  ;;  %s1803_s21 = smov 0   ;;  %s1805_s22 = smov 0  }
   0xb   :  { %s1807_s23 = smov 0   ;;  %s1809_s24 = smov 0  }
   0xc   :  { %s1811_s25 = smov 0   ;;  %s1813_s26 = smov 0  }
   0xd LB: > { %s2197_s27 = sadd.s32 4294967295, %s1751_s26   ;;  %p1044_p0 = scmp.ge.s32.totalorder %s1751_s26, 1  ;;  %s1751_s26 = sphi %s1813_s26, %s25_s26   ;;  %s1747_s25 = sphi %s1811_s25, %s2233_s25   ;;  %s1743_s24 = sphi %s1809_s24, %s2232_s24   ;;  %s1739_s23 = sphi %s1807_s23, %s2231_s23   ;;  %s1735_s22 = sphi %s1805_s22, %s2230_s22   ;;  %s1731_s21 = sphi %s1803_s21, %s2229_s21  }
   0xe   : > { %p1837_p1 = scmp.eq.s32.totalorder %s2197_s27, 0  ;;  %p201_p2 = scmp.lt.s32.totalorder %s1751_s26, 3 }
   0xf   : > { %s1753_s30 = smov [#allocation5]   ;;  %s1754_s9 = smov [#allocation8]  }
  0x10   : > { %s2208_s28 = scalar_select %p1837_p1, 1, 0 }
  0x11   : > { %p1842_p3 = pnand %p1044_p0, %p201_p2  ;;  %s213_s7 = sshll.u32 %s1753_s30, 4  ;;  %s1846_s7 = int_to_ptr.vmem [resolvable:$true] %s213_s7 }
  0x12   : > { %s238_s10 = sshll.u32 %s1754_s9, 4  ;;  %s1755_s11 = smov [#allocation7]   ;;  %s1857_s10 = int_to_ptr.vmem [resolvable:$true] %s238_s10 }
  0x13   : > { %s2209_s29 = scalar_select %p1842_p3, 1, 0 }
  0x14   : > { %p1375_p4 = pneg %p1842_p3  ;;  %s1859_s12 = sshll.u32 %s1755_s11, 4  ;;  %s228_s12 = int_to_ptr.vmem [resolvable:$true] %s1859_s12 }
  0x15   : > { %s2211_s1 = sld [smem:[#allocation19_spill]] }
  0x16   : > { %p1853_p6 = pnand %p1375_p4, %p1837_p1 }
  0x18   : > { %p1869_p8 = pneg %p1853_p6 }
  0x1b   : > { %s1487_s15 = scalar_lea.hbm %s2211_s1, 5120 }
  0x1c   : > { %p1488_p7 = scmp.ne.s32.totalorder %s2211_s1, %s1487_s15  ;;  %p1494_p11 = scmp.lt.u32.totalorder %s1487_s15, %s2211_s1 }
  0x1e   : > { %p1490_p9 = pnand %p1869_p8, %p1488_p7 }
  0x20   : > { %p1491_p10 = pneg %p1490_p9 }
  0x22   : > { %p1496_p12 = pnand %p1494_p11, %p1491_p10 }
  0x24   : > { %1499 = shalt.err (!%p1496_p12)
}
  0x25   : > { %s1500_s30 = scalar_lea.vmem %s1846_s7, 5120  ;;  %p1508_p4 = scmp.lt.s32.totalorder %s1846_s7, %s1846_s7 }
  0x26   : > { %p1501_p13 = scmp.ne.s32.totalorder %s1846_s7, %s1500_s30  ;;  %p1509_p5 = scmp.lt.s32.totalorder %s1500_s30, %s1500_s30 }
  0x28   : > { %p1503_p0 = pnand %p1501_p13, %p1869_p8  ;;  %p1510_p7 = por %p1509_p5, %p1508_p4 }
  0x2a   : > { %p1504_p2 = pneg %p1503_p0 }
  0x2c   : > { %p1511_p9 = pnand %p1510_p7, %p1504_p2 }
  0x2e   : > { %1514 = shalt.err (!%p1511_p9)
}
  0x2f   : > { %s2201_s9 = smov 128   ;;  %s2203_s11 = smov 8  }
  0x30   : > { %1378 = dma.hbm_to_vmem [thread:$0]  (!%p1853_p6), %s2211_s1, 5120, %s1846_s7, [#allocation6], %s2201_s9, %s2201_s9, %s2203_s11  }
  0x31   : > { %s2213_s3 = sld [smem:[#allocation21_spill]] }
  0x37   : > { %s1515_s17 = scalar_lea.hbm %s2213_s3, 16 }
  0x38   : > { %p1516_p5 = scmp.ne.s32.totalorder %s2213_s3, %s1515_s17  ;;  %p1522_p12 = scmp.lt.u32.totalorder %s1515_s17, %s2213_s3 }
  0x3a   : > { %p1518_p10 = pnand %p1516_p5, %p1869_p8 }
  0x3c   : > { %p1519_p11 = pneg %p1518_p10 }
  0x3e   : > { %p1524_p13 = pnand %p1522_p12, %p1519_p11 }
  0x40   : > { %1527 = shalt.err (!%p1524_p13)
}
  0x41   : > { %s1528_s7 = scalar_lea.vmem %s1857_s10, 16  ;;  %s1535_s13 = scalar_lea.vmem %s1857_s10, 32 }
  0x42   : > { %p1529_p0 = scmp.ne.s32.totalorder %s1857_s10, %s1528_s7  ;;  %p1536_p7 = scmp.lt.s32.totalorder %s1857_s10, %s1857_s10 }
  0x43   : > { %p1537_p9 = scmp.lt.s32.totalorder %s1535_s13, %s1528_s7 }
  0x44   : > { %p1531_p2 = pnand %p1529_p0, %p1869_p8 }
  0x45   : > { %p1538_p5 = por %p1537_p9, %p1536_p7 }
  0x46   : > { %p1532_p4 = pneg %p1531_p2 }
  0x48   : > { %p1539_p10 = pnand %p1538_p5, %p1532_p4 }
  0x4a   : > { %1542 = shalt.err (!%p1539_p10)
}
  0x4b   : > { %1384 = dma.hbm_to_vmem [thread:$0]  (!%p1853_p6), %s2213_s3, 16, %s1857_s10, [#allocation9]  }
  0x4c   : > { %s2214_s2 = sld [smem:[#allocation20_spill]] }
  0x52   : > { %s1543_s17 = scalar_lea.hbm %s2214_s2, 16 }
  0x53   : > { %p1544_p11 = scmp.ne.s32.totalorder %s2214_s2, %s1543_s17  ;;  %p1550_p0 = scmp.lt.u32.totalorder %s1543_s17, %s2214_s2 }
  0x55   : > { %p1546_p12 = pnand %p1544_p11, %p1869_p8 }
  0x57   : > { %p1547_p13 = pneg %p1546_p12 }
  0x59   : > { %p1552_p2 = pnand %p1550_p0, %p1547_p13 }
  0x5b   : > { %1555 = shalt.err (!%p1552_p2)
}
  0x5c   : > { %s1556_s13 = scalar_lea.vmem %s228_s12, 16  ;;  %s1563_s10 = scalar_lea.vmem %s228_s12, 32 }
  0x5d   : > { %p1557_p4 = scmp.ne.s32.totalorder %s228_s12, %s1556_s13  ;;  %p1564_p5 = scmp.lt.s32.totalorder %s228_s12, %s228_s12 }
  0x5e   : > { %p1565_p10 = scmp.lt.s32.totalorder %s1563_s10, %s1556_s13 }
  0x5f   : > { %p1559_p7 = pnand %p1557_p4, %p1869_p8 }
  0x60   : > { %p1566_p3 = por %p1565_p10, %p1564_p5 }
  0x61   : > { %p1560_p9 = pneg %p1559_p7 }
  0x63   : > { %p1567_p1 = pnand %p1566_p3, %p1560_p9 }
  0x65   : > { %1570 = shalt.err (!%p1567_p1)
}
  0x66   : > { %1381 = dma.hbm_to_vmem [thread:$0]  (!%p1853_p6), %s2214_s2, 16, %s228_s12, [#allocation6]  }
  0x67   : > { %s1758_s15 = smov [#allocation10]   ;;  %s1759_s17 = smov [#allocation11]  }
  0x68   : > { %s248_s16 = sshll.u32 %s1758_s15, 4  ;;  %s262_s19 = sshll.u32 %s1759_s17, 4  ;;  %s249_s16 = int_to_ptr.vmem [resolvable:$true] %s248_s16  ;;  %s263_s19 = int_to_ptr.vmem [resolvable:$true] %s262_s19 }
  0x69   : > { %s1571_s7 = scalar_lea.hbm %s2194_s4, 6144 }
  0x6a   : > { %p1572_p1 = scmp.ne.s32.totalorder %s2194_s4, %s1571_s7  ;;  %p1578_p12 = scmp.lt.u32.totalorder %s1571_s7, %s2194_s4 }
  0x6c   : > { %p1574_p3 = pnand %p1572_p1, %p1869_p8 }
  0x6e   : > { %p1575_p11 = pneg %p1574_p3 }
  0x70   : > { %p1580_p13 = pnand %p1578_p12, %p1575_p11 }
  0x72   : > { %1583 = shalt.err (!%p1580_p13)
}
  0x73   : > { %s1584_s12 = scalar_lea.vmem %s249_s16, 6144  ;;  %p1592_p7 = scmp.lt.s32.totalorder %s249_s16, %s249_s16 }
  0x74   : > { %p1585_p0 = scmp.ne.s32.totalorder %s249_s16, %s1584_s12  ;;  %p1593_p9 = scmp.lt.s32.totalorder %s1584_s12, %s1584_s12 }
  0x76   : > { %p1587_p2 = pnand %p1585_p0, %p1869_p8  ;;  %p1594_p5 = por %p1593_p9, %p1592_p7 }
  0x78   : > { %p1588_p4 = pneg %p1587_p2 }
  0x7a   : > { %p1595_p10 = pnand %p1594_p5, %p1588_p4 }
  0x7c   : > { %1598 = shalt.err (!%p1595_p10)
}
  0x7d   : > { %s2215_s14 = smov 128   ;;  %s1599_s30 = scalar_lea.hbm %s2195_s5, 16 }
  0x7e   : > { %1387 = dma.hbm_to_vmem [thread:$0]  (!%p1853_p6), %s2194_s4, 6144, %s249_s16, [#allocation9], %s2215_s14, %s2215_s14, %s2203_s11  }
  0x7f   : > { %p1600_p1 = scmp.ne.s32.totalorder %s2195_s5, %s1599_s30  ;;  %p1606_p12 = scmp.lt.u32.totalorder %s1599_s30, %s2195_s5 }
  0x81   : > { %p1602_p3 = pnand %p1600_p1, %p1869_p8 }
  0x83   : > { %p1603_p11 = pneg %p1602_p3 }
  0x85   : > { %p1608_p13 = pnand %p1606_p12, %p1603_p11 }
  0x87   : > { %1611 = shalt.err (!%p1608_p13)
}
  0x88   : > { %s1612_s12 = scalar_lea.vmem %s263_s19, 16  ;;  %s1619_s16 = scalar_lea.vmem %s263_s19, 32 }
  0x89   : > { %p1613_p0 = scmp.ne.s32.totalorder %s263_s19, %s1612_s12  ;;  %p1620_p7 = scmp.lt.s32.totalorder %s263_s19, %s263_s19 }
  0x8a   : > { %p1621_p9 = scmp.lt.s32.totalorder %s1619_s16, %s1612_s12 }
  0x8b   : > { %p1615_p2 = pnand %p1613_p0, %p1869_p8 }
  0x8c   : > { %p1622_p5 = por %p1621_p9, %p1620_p7 }
  0x8d   : > { %p1616_p4 = pneg %p1615_p2 }
  0x8f   : > { %p1623_p10 = pnand %p1622_p5, %p1616_p4 }
  0x91   : > { %1626 = shalt.err (!%p1623_p10)
}
  0x92   : > { %1390 = dma.hbm_to_vmem [thread:$0]  (!%p1853_p6), %s2195_s5, 16, %s263_s19, [#allocation12]  }
  0x93   : > { %s1043_s18 = sadd.s32 4294967294, %s1751_s26   ;;  %s37_s17 = sadd.s32 1, %s1747_s25 }
  0x94   : > { %s44_s8 = sadd.s32 1, %s1739_s23  ;;  %p39_p8 = scmp.ge.s32.totalorder %s37_s17, 2 }
  0x95   : > { %p51_p1 = scmp.ne.s32.totalorder %s1739_s23, %s1735_s22  ;;  %p52_p3 = scmp.eq.s32.totalorder %s1751_s26, 0 }
  0x96   : > { %p57_p11 = scmp.ne.s32.totalorder %s1735_s22, %s1731_s21  ;;  %s2235_s17 = smov (%p39_p8, %s37_s17), 0 }
  0x97   : > { %p1985_p12 = por %p52_p3, %p51_p1  ;;  %p2217_p13 = scmp.ne.s32.totalorder %s2208_s28, 0 }
  0x98   : > { %s41_s30 = ssub.s32 %s1747_s25, %s2235_s17  ;;  %s2219_s7 = sadd.s32 4294967295, %s1751_s26  }
  0x99   : > { %p1991_p6 = por %p2217_p13, %p57_p11  ;;  %p188_p0 = scmp.eq.s32.totalorder %s2219_s7, 1 }
  0x9a   : > { %p42_p2 = scmp.eq.s32.totalorder %s41_s30, 0  ;;  %p194_p4 = scmp.eq.s32.totalorder %s1043_s18, 1 }
  0x9b   : > { %p1999_p7 = por %p188_p0, %p51_p1  ;;  %p1404_p9 = scmp.lt.s32.totalorder %s1751_s26, 2 }
  0x9c   : > { %s2005_s10 = scalar_select %p42_p2, %s1739_s23, %s44_s8  }
  0x9d   : > { %s2220_s13 = scalar_select %p1999_p7, 1, 0 }
  0x9e   : > { %p2007_p5 = por %p194_p4, %p57_p11  ;;  %s273_s12 = sand.u32 1, %s1739_s23  }
  0x9f   : > { %s1348_s16 = smul.u32 24, %s273_s12  ;;  %p2015_p10 = pnand %p1404_p9, %p1985_p12 }
  0xa0   : > { %s2221_s27 = scalar_select %p2007_p5, 1, 0 }
  0xa1   : > { %s1349_s9 = smul.u32 384, %s1747_s25  ;;  %s277_s8 = scalar_lea.vmem [#allocation2], %s1348_s16 }
  0xa2   : > { %s284_s11 = sshll.u32 %s277_s8, 4  ;;  %s2026_s20 = scalar_lea.sflag [#allocation3], %s273_s12  ;;  %s2024_s11 = int_to_ptr.vmem [resolvable:$true] %s284_s11 }
  0xa3   : > { %s2022_s7 = scalar_lea.hbm %s2190_s0, %s1349_s9  ;;  %p1629_p1 = pneg %p2015_p10 }
  0xa4   : > { %s1627_s1 = scalar_lea.hbm %s2022_s7, 384  ;;  %s1632_s30 = scalar_lea.hbm %s2190_s0, 768 }
  0xa5   : > { %p1628_p8 = scmp.ne.s32.totalorder %s2022_s7, %s1627_s1  ;;  %p1633_p12 = scmp.lt.u32.totalorder %s2022_s7, %s2190_s0 }
  0xa6   : > { %p1634_p13 = scmp.lt.u32.totalorder %s1632_s30, %s1627_s1  ;;  %p1636_p2 = scmp.lt.u32.totalorder %s1627_s1, %s2022_s7 }
  0xa7   : > { %p1630_p3 = pnand %p1629_p1, %p1628_p8 }
  0xa8   : > { %p1635_p0 = por %p1634_p13, %p1633_p12 }
  0xa9   : > { %p1631_p11 = pneg %p1630_p3 }
  0xaa   : > { %p1637_p4 = por %p1636_p2, %p1635_p0 }
  0xac   : > { %p1638_p9 = pnand %p1637_p4, %p1631_p11 }
  0xae   : > { %1641 = shalt.err (!%p1638_p9)
}
  0xaf   : > { %s1642_s12 = scalar_lea.vmem %s2024_s11, 384  ;;  %s1760_s16 = smov [#allocation2]  }
  0xb0   : > { %p1643_p8 = scmp.ne.s32.totalorder %s2024_s11, %s1642_s12  ;;  %s1647_s8 = sshll.u32 %s1760_s16, 4  ;;  %s1648_s8 = int_to_ptr.vmem [resolvable:$false] %s1647_s8 }
  0xb1   : > { %s1649_s2 = scalar_lea.vmem %s1648_s8, 768  ;;  %p1650_p7 = scmp.lt.s32.totalorder %s2024_s11, %s1648_s8 }
  0xb2   : > { %p1645_p3 = pnand %p1643_p8, %p1629_p1  ;;  %p1651_p12 = scmp.lt.s32.totalorder %s1649_s2, %s1642_s12 }
  0xb4   : > { %p1646_p5 = pneg %p1645_p3  ;;  %p1652_p13 = por %p1651_p12, %p1650_p7 }
  0xb6   : > { %p1653_p0 = pnand %p1652_p13, %p1646_p5 }
  0xb8   : > { %1656 = shalt.err (!%p1653_p0)
}
  0xb9   : > { %s2223_s1 = smov 8   ;;  %p2224_p1 = scmp.ne.s32.totalorder %s2209_s29, 0 }
  0xba   : > { %1394 = dma.hbm_to_vmem [thread:$0]  (!%p2015_p10), %s2022_s7, 384, %s2024_s11, %s2026_s20, %s2215_s14, %s2215_s14, %s2223_s1  }
  0xbb   : > { %296 = sbr.rel (%p2224_p1) target bundleno = 797 (0x31d), region = 44  ;;  %s2060_s3 = sand.u32 (!%p2224_p1), 1, %s1735_s22  }
  0xbc   : > { %s1350_s9 = smul.u32 (!%p2224_p1), 24, %s2060_s3  ;;  %s299_s18 = scalar_lea.sflag (!%p2224_p1), [#allocation3], %s2060_s3 }
  0xbe   : > { %s302_s30 = scalar_lea.vmem (!%p2224_p1), [#allocation2], %s1350_s9 }
  0xc2   : > { %1710 = dma.done.wait (%p1991_p6), %s299_s18, 384  }
  0xc3   : > { %1712 = vsyncadd (%p1991_p6), %s299_s18, 4294966912  ;;  %p2225_p7 = scmp.ne.s32.totalorder %s2208_s28, 0 }
  0xc5   : > { %1714 = dma.done.wait (%p2225_p7), [#allocation6], 5136  }
  0xc6   : > { %1716 = vsyncadd (%p2225_p7), [#allocation6], 4294962160 }
  0xc7   : > { %1718 = dma.done.wait (%p2225_p7), [#allocation9], 6160  }
  0xc8   : > { %1720 = vsyncadd (%p2225_p7), [#allocation9], 4294961136 }
  0xc9   : > { %1722 = dma.done.wait (%p2225_p7), [#allocation12], 16  }
  0xca   : > { %1724 = vsyncadd (%p2225_p7), [#allocation12], 4294967280  ;;  %v1761_v0 = vmov 0.0|0.0   ;;  %vm1762_vm0 = vmmov 0   ;;  %v1763_v1 = vmov 0.0   ;;  %v2083_v2 = vld [vmem:[%s302_s30] sm:$0xff] }
  0xcb   : > { %1272 = vmatprep.subr.bf16.mxu1 %v1761_v0  ;;  %1196 = vmatprep.mubr.msk.f32.mxu1 %vm1762_vm0, %v1763_v1  ;;  %v2085_v3 = vld [vmem:[%s302_s30 + $0x8] sm:$0xff]  ;;  %vm360_vm1 = vcmask 1046528   ;;  %vm384_vm2 = vcmask 1044480   ;;  %v2087_v4 = vld [vmem:[%s302_s30 + $0x10] sm:$0xff]  ;;  %v361_v5 = vrot.slane %v2083_v2, 1  ;;  %v385_v7 = vrot.slane %v2083_v2, 3 }
  0xcc   : > { %v362_v6 = vrot.slane %v2085_v3, 1  ;;  %v386_v8 = vrot.slane %v2085_v3, 3  ;;  %v428_v9 = vld [vmem:[#allocation5 + $0x80] sm:$0xff]  ;;  %v429_v10 = vld [vmem:[#allocation5 + $0x88] sm:$0xff]  ;;  %v364_v11 = vrot.slane %v2087_v4, 1  ;;  %v388_v12 = vrot.slane %v2087_v4, 3 }
  0xcd   : > { %v1240_v13 = vpack.c.bf16 %v429_v10, %v428_v9  ;;  %v412_v14 = vld [vmem:[#allocation5] sm:$0xff]  ;;  %v413_v15 = vld [vmem:[#allocation5 + $0x8] sm:$0xff]  ;;  %v430_v16 = vld [vmem:[#allocation5 + $0x90] sm:$0xff]  ;;  %s1764_s28 = smov 64   ;;  %v400_v10 = vrot.slane %v2083_v2, 4  ;;  %vm399_vm3 = vcmask 1043456  }
  0xce   : > { %v363_v17 = vsel %vm360_vm1, %v361_v5, %v362_v6  ;;  %v387_v18 = vsel %vm384_vm2, %v385_v7, %v386_v8  ;;  %v1242_v19 = vpack.c.bf16 %v413_v15, %v412_v14  ;;  %v431_v20 = vld [vmem:[#allocation5 + $0x98] sm:$0xff]  ;;  %v414_v21 = vld [vmem:[#allocation5 + $0x10] sm:$0xff]  ;;  %v365_v24 = vsel %vm360_vm1, %v362_v6, %v364_v11  ;;  %v432_v27 = vld [vmem:[#allocation5 + $0xa0] sm:$0xff]  ;;  %s1058_s29 = sshll.u32 %s2060_s3, 4  ;;  %s1071_s19 = sshll.u32 %s1743_s24, 8 }
  0xcf   : > { %v415_v22 = vld [vmem:[#allocation5 + $0x18] sm:$0xff]  ;;  %v1472_v23 = vpack.i.bf16 %v363_v17, %v387_v18  ;;  %v389_v25 = vsel %vm384_vm2, %v386_v8, %v388_v12  ;;  %v1482_v26 = vpack.i.bf16 %v364_v11, %v388_v12  ;;  %1241 = vmatprep.subr.bf16.mxu0 %v1240_v13  ;;  %v433_v28 = vld [vmem:[#allocation5 + $0xa8] sm:$0xff]  ;;  %v1244_v29 = vpack.c.bf16 %v431_v20, %v430_v16  ;;  %v416_v33 = vld [vmem:[#allocation5 + $0x20] sm:$0xff]  ;;  %s350_s11 = scalar_lea.vmem [#allocation13], %s1058_s29  ;;  %s2141_s20 = scalar_lea.hbm %s2196_s6, %s1071_s19 }
  0xd0   : > { %1243 = vmatpush3.bf16.msra.mxu0 %v1242_v19  ;;  %v1246_v30 = vpack.c.bf16 %v415_v22, %v414_v21  ;;  %v1477_v31 = vpack.i.bf16 %v365_v24, %v389_v25  ;;  %v1248_v32 = vpack.c.bf16 %v433_v28, %v432_v27  ;;  %v417_v34 = vld [vmem:[#allocation5 + $0x28] sm:$0xff]  ;;  %v434_v35 = vld [vmem:[#allocation5 + $0xb0] sm:$0xff]  ;;  %v435_v36 = vld [vmem:[#allocation5 + $0xb8] sm:$0xff]  ;;  %v401_v11 = vrot.slane %v2085_v3, 4  ;;  %s908_s14 = sshll.u32 %s350_s11, 4  ;;  %s893_s12 = scalar_lea.sflag [#allocation4], %s2060_s3  ;;  %s2136_s14 = int_to_ptr.vmem [resolvable:$true] %s908_s14 }
  0xd1   : > { %1473 = vrot.lane.b32.xlu0 %v1472_v23, %s1764_s28  ;;  %1483 = vrot.lane.b32.xlu1 %v1482_v26, %s1764_s28  ;;  %v1250_v37 = vpack.c.bf16 %v417_v34, %v416_v33  ;;  %v444_v38 = vld [vmem:[#allocation5 + $0x100] sm:$0xff]  ;;  %v445_v39 = vld [vmem:[#allocation5 + $0x108] sm:$0xff]  ;;  %v1252_v40 = vpack.c.bf16 %v435_v36, %v434_v35  ;;  %v418_v41 = vld [vmem:[#allocation5 + $0x30] sm:$0xff]  ;;  %v403_v24 = vrot.slane %v2087_v4, 4  ;;  %vm405_vm4 = vcmask 523264   ;;  %s1657_s16 = scalar_lea.vmem %s2136_s14, 256 }
  0xd2   : > { %1245 = vmatprep.subr.bf16.mxu0 %v1244_v29  ;;  %v419_v42 = vld [vmem:[#allocation5 + $0x38] sm:$0xff]  ;;  %v436_v43 = vld [vmem:[#allocation5 + $0xc0] sm:$0xff]  ;;  %v1273_v44 = vpack.c.bf16 %v445_v39, %v444_v38  ;;  %v437_v45 = vld [vmem:[#allocation5 + $0xc8] sm:$0xff]  ;;  %v402_v23 = vsel %vm399_vm3, %v400_v10, %v401_v11  ;;  %vm375_vm5 = vcmask 1045504   ;;  %p1658_p6 = scmp.ne.s32.totalorder %s2136_s14, %s1657_s16  ;;  %p2226_p5 = scmp.ne.s32.totalorder %s2220_s13, 0 }
  0xd3   : > { %v446_v46 = vld [vmem:[#allocation5 + $0x110] sm:$0xff]  ;;  %v447_v47 = vld [vmem:[#allocation5 + $0x118] sm:$0xff]  ;;  %v1254_v49 = vpack.c.bf16 %v419_v42, %v418_v41  ;;  %v448_v50 = vld [vmem:[#allocation5 + $0x120] sm:$0xff]  ;;  %v1256_v52 = vpack.c.bf16 %v437_v45, %v436_v43  ;;  %v404_v36 = vsel %vm399_vm3, %v401_v11, %v403_v24  ;;  %s1765_s24 = smov [#allocation13]  }
  0xd4   : > { %1247 = vmatpush3.bf16.msra.mxu0 %v1246_v30  ;;  %1274 = vmatpush3.bf16.msra.mxu1 %v1273_v44  ;;  %v1276_v48 = vpack.c.bf16 %v447_v47, %v446_v46  ;;  %v449_v51 = vld [vmem:[#allocation5 + $0x128] sm:$0xff]  ;;  %v420_v53 = vld [vmem:[#allocation5 + $0x40] sm:$0xff]  ;;  %v438_v55 = vld [vmem:[#allocation5 + $0xd0] sm:$0xff]  ;;  %v376_v47 = vrot.slane %v2083_v2, 2  ;;  %p1659_p10 = pnand %p1658_p6, %p2226_p5  ;;  %s1661_s8 = sshll.u32 %s1765_s24, 4  ;;  %s1662_s8 = int_to_ptr.vmem [resolvable:$false] %s1661_s8 }
  0xd5   : > { %1478 = vrot.lane.b32.xlu0 %v1477_v31, %s1764_s28  ;;  %1249 = vmatprep.subr.bf16.mxu0 %v1248_v32  ;;  %v421_v54 = vld [vmem:[#allocation5 + $0x48] sm:$0xff]  ;;  %v439_v56 = vld [vmem:[#allocation5 + $0xd8] sm:$0xff]  ;;  %v1279_v57 = vpack.c.bf16 %v449_v51, %v448_v50  ;;  %v422_v59 = vld [vmem:[#allocation5 + $0x50] sm:$0xff]  ;;  %s1663_s2 = scalar_lea.vmem %s1662_s8, 512  ;;  %p1664_p2 = scmp.lt.s32.totalorder %s2136_s14, %s1662_s8 }
  0xd6   : > { %1275 = vmatprep.subr.bf16.mxu1 %v1761_v0  ;;  %v1258_v58 = vpack.c.bf16 %v421_v54, %v420_v53  ;;  %v450_v60 = vld [vmem:[#allocation5 + $0x130] sm:$0xff]  ;;  %v451_v61 = vld [vmem:[#allocation5 + $0x138] sm:$0xff]  ;;  %v1260_v62 = vpack.c.bf16 %v439_v56, %v438_v55  ;;  %v701_v5 = vld [vmem:[#allocation10 + $0x80] sm:$0xff]  ;;  %p1660_p11 = pneg %p1659_p10  ;;  %p1665_p4 = scmp.lt.s32.totalorder %s1663_s2, %s1657_s16 }
  0xd7   : > { %v423_v63 = vld [vmem:[#allocation5 + $0x58] sm:$0xff]  ;;  %v702_v6 = vld [vmem:[#allocation10 + $0x88] sm:$0xff]  ;;  %v440_v7 = vld [vmem:[#allocation5 + $0xe0] sm:$0xff]  ;;  %v1282_v9 = vpack.c.bf16 %v451_v61, %v450_v60 }
  0xd8   : > { %1251 = vmatpush3.bf16.msra.mxu0 %v1250_v37  ;;  %1277 = vmatpush3.bf16.msra.mxu1 %v1276_v48  ;;  %v441_v8 = vld [vmem:[#allocation5 + $0xe8] sm:$0xff]  ;;  %v1262_v12 = vpack.c.bf16 %v423_v63, %v422_v59  ;;  %v424_v13 = vld [vmem:[#allocation5 + $0x60] sm:$0xff]  ;;  %v1284_v14 = vpack.c.bf16 %v702_v6, %v701_v5  ;;  %v703_v19 = vld [vmem:[#allocation10 + $0x90] sm:$0xff]  ;;  %v377_v48 = vrot.slane %v2085_v3, 2  ;;  %p1666_p9 = por %p1665_p4, %p1664_p2 }
  0xd9   : > { %1253 = vmatprep.subr.bf16.mxu0 %v1252_v40  ;;  %1278 = vmatprep.subr.bf16.mxu1 %v1761_v0  ;;  %v685_v15 = vld [vmem:[#allocation10] sm:$0xff]  ;;  %v686_v16 = vld [vmem:[#allocation10 + $0x8] sm:$0xff]  ;;  %v1264_v17 = vpack.c.bf16 %v441_v8, %v440_v7  ;;  %v704_v20 = vld [vmem:[#allocation10 + $0x98] sm:$0xff] }
  0xda   : > { %v425_v18 = vld [vmem:[#allocation5 + $0x68] sm:$0xff]  ;;  %v442_v21 = vld [vmem:[#allocation5 + $0xf0] sm:$0xff]  ;;  %v443_v22 = vld [vmem:[#allocation5 + $0xf8] sm:$0xff]  ;;  %v1286_v25 = vpack.c.bf16 %v686_v16, %v685_v15  ;;  %v1288_v27 = vpack.c.bf16 %v704_v20, %v703_v19  ;;  %v378_v50 = vsel %vm375_vm5, %v376_v47, %v377_v48  ;;  %p1667_p8 = pnand %p1666_p9, %p1660_p11 }
  0xdb   : > { %v1266_v26 = vpack.c.bf16 %v425_v18, %v424_v13  ;;  %v687_v28 = vld [vmem:[#allocation10 + $0x10] sm:$0xff]  ;;  %v688_v29 = vld [vmem:[#allocation10 + $0x18] sm:$0xff]  ;;  %v1268_v30 = vpack.c.bf16 %v443_v22, %v442_v21  ;;  %v705_v32 = vld [vmem:[#allocation10 + $0xa0] sm:$0xff] }
  0xdc   : > { %1255 = vmatpush3.bf16.msra.mxu0 %v1254_v49  ;;  %1280 = vmatpush3.bf16.msra.mxu1 %v1279_v57  ;;  %v427_v31 = vld [vmem:[#allocation5 + $0x78] sm:$0xff]  ;;  %v706_v33 = vld [vmem:[#allocation10 + $0xa8] sm:$0xff]  ;;  %v717_v34 = vld [vmem:[#allocation10 + $0x100] sm:$0xff]  ;;  %v1290_v37 = vpack.c.bf16 %v688_v29, %v687_v28 }
  0xdd   : > { %1257 = vmatprep.subr.bf16.mxu0 %v1256_v52  ;;  %1281 = vmatprep.subr.bf16.mxu1 %v1761_v0  ;;  %v426_v0 = vld [vmem:[#allocation5 + $0x70] sm:$0xff]  ;;  %v1292_v39 = vpack.c.bf16 %v706_v33, %v705_v32  ;;  %v689_v40 = vld [vmem:[#allocation10 + $0x20] sm:$0xff]  ;;  %v708_v44 = vld [vmem:[#allocation10 + $0xb8] sm:$0xff] }
  0xde   : > { %v718_v35 = vld [vmem:[#allocation10 + $0x108] sm:$0xff]  ;;  %v1270_v38 = vpack.c.bf16 %v427_v31, %v426_v0  ;;  %v707_v43 = vld [vmem:[#allocation10 + $0xb0] sm:$0xff]  ;;  %v720_v53 = vld [vmem:[#allocation10 + $0x118] sm:$0xff] }
  0xdf   : > { %v690_v41 = vld [vmem:[#allocation10 + $0x28] sm:$0xff]  ;;  %v1316_v42 = vpack.c.bf16 %v718_v35, %v717_v34  ;;  %v1296_v46 = vpack.c.bf16 %v708_v44, %v707_v43  ;;  %v719_v52 = vld [vmem:[#allocation10 + $0x110] sm:$0xff]  ;;  %v692_v13 = vld [vmem:[#allocation10 + $0x38] sm:$0xff] }
  0xe0   : > { %1259 = vmatpush3.bf16.msra.mxu0 %v1258_v58  ;;  %1283 = vmatpush3.bf16.msra.mxu1 %v1282_v9  ;;  %v1294_v45 = vpack.c.bf16 %v690_v41, %v689_v40  ;;  %v1320_v59 = vpack.c.bf16 %v720_v53, %v719_v52  ;;  %v722_v63 = vld [vmem:[#allocation10 + $0x128] sm:$0xff]  ;;  %v709_v15 = vld [vmem:[#allocation10 + $0xc0] sm:$0xff]  ;;  %v723_v16 = vld [vmem:[#allocation10 + $0x130] sm:$0xff] }
  0xe1   : > { %1261 = vmatprep.subr.bf16.mxu0 %v1260_v62  ;;  %1285 = vmatprep.subr.bf16.mxu1 %v1284_v14  ;;  %v721_v62 = vld [vmem:[#allocation10 + $0x120] sm:$0xff]  ;;  %v724_v18 = vld [vmem:[#allocation10 + $0x138] sm:$0xff]  ;;  %v694_v20 = vld [vmem:[#allocation10 + $0x48] sm:$0xff] }
  0xe2   : > { %v1324_v10 = vpack.c.bf16 %v722_v63, %v721_v62  ;;  %v693_v19 = vld [vmem:[#allocation10 + $0x40] sm:$0xff]  ;;  %v1328_v21 = vpack.c.bf16 %v724_v18, %v723_v16  ;;  %v695_v0 = vld [vmem:[#allocation10 + $0x50] sm:$0xff]  ;;  %v714_v31 = vld [vmem:[#allocation10 + $0xe8] sm:$0xff] }
  0xe3   : > { %1197 = vmatmul.mubr.msk.f32.vlgmr.msra.gmra.mrb[0].mxu1 %vm405_vm4, %v402_v23  ;;  %v1302_v22 = vpack.c.bf16 %v694_v20, %v693_v19  ;;  %v712_v23 = vld [vmem:[#allocation10 + $0xd8] sm:$0xff]  ;;  %v727_v32 = vld [vmem:[#allocation10 + $0x150] sm:$0xff]  ;;  %v697_v35 = vld [vmem:[#allocation10 + $0x60] sm:$0xff] }
  0xe4   : > { %1263 = vmatpush3.bf16.msra.mxu0 %v1262_v12  ;;  %1199 = vmatprep.mubr.msk.f32.mxu1 %vm1762_vm0, %v1763_v1  ;;  %v691_v12 = vld [vmem:[#allocation10 + $0x30] sm:$0xff]  ;;  %v728_v34 = vld [vmem:[#allocation10 + $0x158] sm:$0xff]  ;;  %v729_v41 = vld [vmem:[#allocation10 + $0x160] sm:$0xff] }
  0xe5   : > { %1265 = vmatprep.subr.bf16.mxu0 %v1264_v17  ;;  %1287 = vmatpush3.bf16.msra.mxu1 %v1286_v25  ;;  %v1298_v14 = vpack.c.bf16 %v692_v13, %v691_v12  ;;  %v716_v40 = vld [vmem:[#allocation10 + $0xf8] sm:$0xff]  ;;  %v730_v43 = vld [vmem:[#allocation10 + $0x168] sm:$0xff]  ;;  %v699_v44 = vld [vmem:[#allocation10 + $0x70] sm:$0xff] }
  0xe6   : > { %1289 = vmatprep.subr.bf16.mxu1 %v1288_v27  ;;  %v696_v27 = vld [vmem:[#allocation10 + $0x58] sm:$0xff] }
  0xe7   : > { %1200 = vmatmul.mubr.msk.f32.gmra.mrb[2].mxu1 %vm405_vm4, %v404_v36  ;;  %v1306_v29 = vpack.c.bf16 %v696_v27, %v695_v0  ;;  %v698_v36 = vld [vmem:[#allocation10 + $0x68] sm:$0xff] }
  0xe8   : > { %1267 = vmatpush3.bf16.msra.mxu0 %v1266_v26  ;;  %1202 = vmatprep.mubr.msk.f32.mxu1 %vm1762_vm0, %v1763_v1  ;;  %v379_v1 = vrot.slane %v2087_v4, 2  ;;  %v726_v26 = vld [vmem:[#allocation10 + $0x148] sm:$0xff] }
  0xe9   : > { %1269 = vmatprep.subr.bf16.mxu0 %v1268_v30  ;;  %1291 = vmatpush3.bf16.msra.mxu1 %v1290_v37  ;;  %v713_v30 = vld [vmem:[#allocation10 + $0xe0] sm:$0xff]  ;;  %v1336_v37 = vpack.c.bf16 %v728_v34, %v727_v32 }
  0xea   : > { %1293 = vmatprep.subr.bf16.mxu1 %v1292_v39  ;;  %v380_v61 = vsel %vm375_vm5, %v377_v48, %v379_v1  ;;  %v1308_v33 = vpack.c.bf16 %v714_v31, %v713_v30  ;;  %v715_v39 = vld [vmem:[#allocation10 + $0xf0] sm:$0xff] }
  0xeb   : > { %1203 = vmatmul.mubr.msk.f32.gmra.mrb[4].mxu1 %vm405_vm4, %v403_v24  ;;  %v725_v24 = vld [vmem:[#allocation10 + $0x140] sm:$0xff]  ;;  %v731_v48 = vld [vmem:[#allocation10 + $0x170] sm:$0xff] }
  0xec   : > { %1271 = vmatpush3.bf16.msra.mxu0 %v1270_v38  ;;  %v1332_v28 = vpack.c.bf16 %v726_v26, %v725_v24  ;;  %v1310_v38 = vpack.c.bf16 %v698_v36, %v697_v35  ;;  %v1064_v35 = vld [vmem:[#allocation11] ss:$0 sm:$0xff] }
  0xed   : > { %1317 = vmatprep.subr.bf16.mxu0 %v1316_v42  ;;  %1295 = vmatpush3.bf16.msra.mxu1 %v1294_v45  ;;  %v700_v45 = vld [vmem:[#allocation10 + $0x78] sm:$0xff] }
  0xee   : > { %1297 = vmatprep.subr.bf16.mxu1 %v1296_v46  ;;  %v1340_v46 = vpack.c.bf16 %v730_v43, %v729_v41  ;;  %v1314_v47 = vpack.c.bf16 %v700_v45, %v699_v44 }
  0xf1   : > { %1299 = vmatpush3.bf16.msra.mxu1 %v1298_v14 }
 0x143   : > { %v1474_v49 = vpop.permute.xlu0 %1473  ;;  %v1484_v51 = vpop.permute.xlu1 %1483 }
 0x144   : > { %v1476_v54 = vunpack.i.h.bf16 %v1474_v49  ;;  %v1475_v55 = vunpack.i.l.bf16 %v1474_v49  ;;  %v1485_v58 = vunpack.i.l.bf16 %v1484_v51  ;;  %v1486_v7 = vunpack.i.h.bf16 %v1484_v51  ;;  %v732_v49 = vld [vmem:[#allocation10 + $0x178] sm:$0xff] }
 0x146   : > { %v409_v56 = vsel %vm405_vm4, %v378_v50, %v1475_v55  ;;  %v406_v57 = vsel %vm405_vm4, %v2083_v2, %v1476_v54  ;;  %v411_v2 = vsel %vm405_vm4, %v379_v1, %v1485_v58  ;;  %v408_v11 = vsel %vm405_vm4, %v2087_v4, %v1486_v7  ;;  %v711_v4 = vld [vmem:[#allocation10 + $0xd0] sm:$0xff] }
 0x147   : > { %v1479_v60 = vpop.permute.xlu0 %1478  ;;  %529 = vmatprep.mubr.f32.mxu0 %v409_v56  ;;  %v1304_v25 = vpack.c.bf16 %v712_v23, %v711_v4  ;;  %v1344_v50 = vpack.c.bf16 %v732_v49, %v731_v48  ;;  %v641_v56 = vlaneseq }
 0x148   : > { %v1481_v5 = vunpack.i.h.bf16 %v1479_v60  ;;  %v1480_v6 = vunpack.i.l.bf16 %v1479_v60  ;;  %530 = vmatmul.mubr.f32.vlgmr.msra.gmra.mrb[0].mxu0 %v406_v57 }
 0x149   : > { %1319 = vmatpush3.bf16.msra.mxu0 %v1316_v42  ;;  %v1312_v42 = vpack.c.bf16 %v716_v40, %v715_v39  ;;  %v642_v60 = vshrl.u32 %v641_v56, 7 }
 0x14a   : > { %v410_v8 = vsel %vm405_vm4, %v380_v61, %v1480_v6  ;;  %v407_v9 = vsel %vm405_vm4, %v2085_v3, %v1481_v5  ;;  %1321 = vmatprep.subr.bf16.mxu0 %v1320_v59  ;;  %v710_v3 = vld [vmem:[#allocation10 + $0xc8] sm:$0xff]  ;;  %v1063_v5 = vld [vmem:[#allocation8] ss:$0 sm:$0xff] }
 0x14b   : > { %534 = vmatprep.mubr.f32.mxu0 %v410_v8  ;;  %v1300_v17 = vpack.c.bf16 %v710_v3, %v709_v15  ;;  %v647_v6 = vadd.s32 4294967295, %v642_v60 }
 0x14c   : > { %535 = vmatmul.mubr.f32.gmra.mrb[2].mxu0 %v407_v9 }
 0x14d   : > { %539 = vmatprep.mubr.f32.mxu0 %v411_v2  ;;  %1323 = vmatpush3.bf16.msra.mxu0 %v1320_v59  ;;  %v1059_v59 = vld [vmem:[#allocation7] ss:$0 sm:$0xff]  ;;  %v644_v2 = vadd.s32 16, %v642_v60  ;;  %vm650_vm7 = vcmp.ge.s32.totalorder %v647_v6, 0 }
 0x14e   : > { %1325 = vmatprep.subr.bf16.mxu0 %v1324_v10  ;;  %1301 = vmatprep.subr.bf16.mxu1 %v1300_v17 }
 0x14f   : > { %1303 = vmatpush3.bf16.msra.mxu1 %v1302_v22  ;;  %v649_v16 = vadd.s32 4294967295, %v644_v2 }
 0x150   : > { %540 = vmatmul.mubr.f32.gmra.mrb[4].mxu0 %v408_v11  ;;  %1305 = vmatprep.subr.bf16.mxu1 %v1304_v25 }
 0x151   : > { %1327 = vmatpush3.bf16.msra.mxu0 %v1324_v10  ;;  %vm655_vm10 = vcmp.lt.s32.totalorder %v649_v16, 16 }
 0x152   : > { %1329 = vmatprep.subr.bf16.mxu0 %v1328_v21 }
 0x153   : > { %1307 = vmatpush3.bf16.msra.mxu1 %v1306_v29 }
 0x154   : > { %1309 = vmatprep.subr.bf16.mxu1 %v1308_v33 }
 0x155   : > { %1331 = vmatpush3.bf16.msra.mxu0 %v1328_v21 }
 0x156   : > { %1333 = vmatprep.subr.bf16.mxu0 %v1332_v28 }
 0x157   : > { %1311 = vmatpush3.bf16.msra.mxu1 %v1310_v38 }
 0x158   : > { %1313 = vmatprep.subr.bf16.mxu1 %v1312_v42 }
 0x159   : > { %1335 = vmatpush3.bf16.msra.mxu0 %v1332_v28 }
 0x15a   : > { %1337 = vmatprep.subr.bf16.mxu0 %v1336_v37 }
 0x15b   : > { %1315 = vmatpush3.bf16.msra.mxu1 %v1314_v47 }
 0x15d   : > { %1339 = vmatpush3.bf16.msra.mxu0 %v1336_v37 }
 0x15e   : > { %1341 = vmatprep.subr.bf16.mxu0 %v1340_v46 }
 0x161   : > { %1343 = vmatpush3.bf16.msra.mxu0 %v1340_v46 }
 0x162   : > { %1345 = vmatprep.subr.bf16.mxu0 %v1344_v50 }
 0x165   : > { %1347 = vmatpush3.bf16.msra.mxu0 %v1344_v50 }
 0x1b6   : > { %v611_v51 = vpop.f32.mrb[0].mxu1 }
 0x1b7   : > { %v1198_v1 = vpop.f32.mrb[1].mxu1 }
 0x1ba   : > { %v616_v52 = vpop.f32.mrb[2].mxu1 }
 0x1bb   : > { %v1201_v53 = vpop.f32.mrb[3].mxu1 }
 0x1be   : > { %v621_v54 = vpop.f32.mrb[4].mxu1 }
 0x1bf   : > { %v1204_v55 = vpop.f32.mrb[5].mxu1 }
 0x21b   : > { %v1104_v57 = vpop.f32.mrb[0].mxu0 }
 0x21c   : > { %v1105_v58 = vpop.f32.mrb[1].mxu0 }
 0x21d   : > { %v1106_v61 = vadd.f32 %v1105_v58, %v1104_v57 }
 0x21f   : > { %v1107_v62 = vpop.f32.mrb[2].mxu0  ;;  %v532_v63 = vadd.f32 %v1106_v61, %v1059_v59 }
 0x220   : > { %v1108_v7 = vpop.f32.mrb[3].mxu0 }
 0x221   : > { %v612_v8 = vadd.f32 %v611_v51, %v532_v63  ;;  %v1109_v9 = vadd.f32 %v1108_v7, %v1107_v62 }
 0x223   : > { %vm625_vm6 = vcmp.ge.f32.partialorder %v612_v8, 0.0  ;;  %v635_v10 = vmul.f32 %v1063_v5, %v612_v8  ;;  %v1110_v11 = vpop.f32.mrb[4].mxu0  ;;  %v537_v12 = vadd.f32 %v1109_v9, %v1059_v59 }
 0x224   : > { %v1111_v13 = vpop.f32.mrb[5].mxu0 }
 0x225   : > { %v638_v14 = vsel %vm625_vm6, %v612_v8, %v635_v10  ;;  %v617_v15 = vadd.f32 %v616_v52, %v537_v12  ;;  %v1112_v3 = vadd.f32 %v1111_v13, %v1110_v11 }
 0x226   : > { %v665_v17 = vsel %vm650_vm7, %v638_v14, 0.0 }
 0x227   : > { %vm626_vm8 = vcmp.ge.f32.partialorder %v617_v15, 0.0  ;;  %v636_v18 = vmul.f32 %v1063_v5, %v617_v15  ;;  %v542_v19 = vadd.f32 %v1112_v3, %v1059_v59  ;;  %v671_v22 = vrot.slane %v665_v17, 1 }
 0x228   : > { %v678_v23 = vrot.slane %v665_v17, 2 }
 0x229   : > { %v639_v20 = vsel %vm626_vm8, %v617_v15, %v636_v18  ;;  %v622_v21 = vadd.f32 %v621_v54, %v542_v19 }
 0x22a   : > { %v672_v4 = vrot.slane %v639_v20, 1  ;;  %v679_v24 = vrot.slane %v639_v20, 2 }
 0x22b   : > { %vm627_vm9 = vcmp.ge.f32.partialorder %v622_v21, 0.0  ;;  %v637_v25 = vmul.f32 %v1063_v5, %v622_v21 }
 0x22c   : > { %v673_v26 = vsel %vm360_vm1, %v671_v22, %v672_v4  ;;  %v680_v0 = vsel %vm375_vm5, %v678_v23, %v679_v24 }
 0x22d   : > { %v640_v27 = vsel %vm627_vm9, %v622_v21, %v637_v25  ;;  %804 = vmatprep.mubr.f32.mxu1 %v673_v26  ;;  %1237 = vmatprep.mubr.f32.mxu0 %v680_v0 }
 0x22e   : > { %v667_v28 = vsel %vm655_vm10, %v640_v27, 0.0  ;;  %1065 = vmatmul.mubr.msk.f32.vlgmr.msra.gmra.mrb[6].mxu1 %vm650_vm7, %v638_v14 }
 0x22f   : > { %v681_v29 = vrot.slane %v667_v28, 2  ;;  %v674_v30 = vrot.slane %v667_v28, 1 }
 0x231   : > { %v675_v31 = vsel %vm360_vm1, %v672_v4, %v674_v30  ;;  %v682_v32 = vsel %vm375_vm5, %v679_v24, %v681_v29 }
 0x232   : > { %809 = vmatprep.mubr.f32.mxu1 %v675_v31  ;;  %1238 = vmatmul.mubr.f32.vlgmr.msra.gmra.mrb[6].mxu0 %v682_v32 }
 0x233   : > { %810 = vmatmul.mubr.f32.gmra.mrb[8].mxu1 %v639_v20 }
 0x301   : > { %v1156_v33 = vpop.f32.mrb[6].mxu1 }
 0x302   : > { %v1157_v34 = vpop.f32.mrb[7].mxu1 }
 0x303   : > { %v1158_v36 = vadd.f32 %v1157_v34, %v1156_v33 }
 0x305   : > { %v1239_v37 = vpop.f32.mrb[6].mxu0  ;;  %v807_v38 = vadd.f32 %v1158_v36, %v1064_v35 }
 0x306   : > { %v1159_v39 = vpop.f32.mrb[8].mxu1  ;;  %v881_v40 = vpop.f32.mrb[7].mxu0 }
 0x307   : > { %v882_v41 = vadd.f32 %v881_v40, %v807_v38  ;;  %v1160_v42 = vpop.f32.mrb[9].mxu1 }
 0x308   : > { %v1161_v43 = vadd.f32 %v1160_v42, %v1159_v39 }
 0x309   : > { %890 = vst [vmem:[%s350_s11] sm:$0xff] %v882_v41 }
 0x30a   : > { %v812_v44 = vadd.f32 %v1161_v43, %v1064_v35 }
 0x30c   : > { %v887_v45 = vadd.f32 %v1239_v37, %v812_v44 }
 0x30e   : > { %891 = vst [vmem:[%s350_s11 + $0x8] sm:$0xff] %v887_v45 }
 0x30f   : > { %1670 = shalt.err (!%p1667_p8)
}
 0x310   : > { %s1671_s1 = scalar_lea.hbm %s2141_s20, 256  ;;  %s1675_s30 = scalar_lea.hbm %s2196_s6, 512 }
 0x311   : > { %p1672_p3 = scmp.ne.s32.totalorder %s2141_s20, %s1671_s1  ;;  %p1676_p0 = scmp.lt.u32.totalorder %s2141_s20, %s2196_s6 }
 0x312   : > { %p1677_p1 = scmp.lt.u32.totalorder %s1675_s30, %s1671_s1  ;;  %p1679_p6 = scmp.lt.u32.totalorder %s1671_s1, %s2141_s20 }
 0x313   : > { %p1673_p12 = pnand %p1672_p3, %p2226_p5 }
 0x314   : > { %p1678_p7 = por %p1677_p1, %p1676_p0 }
 0x315   : > { %p1674_p13 = pneg %p1673_p12 }
 0x316   : > { %p1680_p10 = por %p1679_p6, %p1678_p7 }
 0x318   : > { %p1681_p11 = pnand %p1680_p10, %p1674_p13 }
 0x31a   : > { %1684 = shalt.err (!%p1681_p11)
}
 0x31b   : > { %s1766_s11 = smov 128   ;;  %s1767_s19 = smov 8  }
 0x31c   : > { %1373 = dma.vmem_to_hbm [thread:$0]  (%p2226_p5), %s2136_s14, 256, %s2141_s20, %s893_s12, %s1766_s11, %s1766_s11, %s1767_s19  }
 0x31d PF: > { %s923_s15 = sand.u32 1, %s1731_s21   ;;  %p2227_p2 = scmp.ne.s32.totalorder %s2221_s27, 0 }
 0x31e   : > { %p2228_p4 = scmp.ge.s32.totalorder %s1751_s26, 2  ;;  %s924_s7 = scalar_lea.sflag [#allocation4], %s923_s15 }
 0x320   : > { %p1396_p9 = pnand %p2228_p4, %p2227_p2 }
 0x322   : > { %1726 = dma.done.wait (!%p1396_p9), %s924_s7, 256  }
 0x323   : > { %1728 = vsyncadd (!%p1396_p9), %s924_s7, 4294967040  ;;  %s25_s26 = sadd.s32 1, %s1751_s26   ;;  %s2229_s21 = smov %s1735_s22 }
 0x324   : > { %p22_p8 = scmp.ge.s32.totalorder %s25_s26, 4   ;;  %s2230_s22 = smov %s1739_s23 }
 0x325   : > { %s2231_s23 = smov %s2005_s10  ;;  %s2232_s24 = smov %s1747_s25 }
 0x326   : > { %s2233_s25 = smov %s2235_s17  ;;  %24 = sbr.rel (!%p22_p8) target bundleno = 13 (0xd), region = 110 }
 0x32d   :  { %929 = vsyncpa [#allocation3], 1 }
 0x32e   :  { %931 = vsyncpa [#allocation3 + $0x1], 1 }
 0x32f   :  { %932 = vsyncpa [#allocation6], 1 }
 0x330   :  { %933 = vsyncpa [#allocation9], 1 }
 0x331   :  { %934 = vsyncpa [#allocation12], 1 }
 0x332   :  { %935 = vsyncpa [#allocation4], 1 }
 0x333   :  { %937 = vsyncpa [#allocation4 + $0x1], 1 }

</bundles_post_ra>
